<compile_context>
chip_gen: v7x
topology: tpu7x:2x2x1
jax: 0.10.0
libtpu: 0.0.40
codegen_flags: <defaults>
</compile_context>

<pallas_src>
import functools

import jax
import jax.numpy as jnp
from jax.experimental import pallas as pl
from jax.experimental.pallas import tpu as pltpu


def _round_up(x, m):
    return ((x + m - 1) // m) * m


def _pick_batch_tile(batch, per_batch_bytes, budget_bytes=24 << 20):
    """Largest divisor of `batch` whose double-buffered tiles fit the VMEM budget,
    capped so the grid keeps >= 2 steps (fills both TensorCores on v7x)."""
    cap = max(1, budget_bytes // max(per_batch_bytes, 1) // 2)  # /2: double buffer
    cap = min(cap, batch)
    if batch >= 2:
        cap = min(cap, batch // 2)
    for bt in range(int(cap), 0, -1):
        if batch % bt == 0:
            return bt
    return 1


def _fel_kernel(x_ref, w_ref, c_ref, *out_refs, cp, n_valid, bt, split):
    """1x1 conv (BN scale pre-folded into W) + shift + LeakyReLU + point max."""
    w = w_ref[...]                       # (Cp, C_in)   BN-scaled weights
    c = c_ref[...]                       # (Cp, 1)      BN shift
    n_pad = x_ref.shape[-1]

    col = None
    if n_valid != n_pad:                 # hoisted out of the batch loop
        col = jax.lax.broadcasted_iota(jnp.int32, (w.shape[0], n_pad), 1)

    for b in range(bt):                  # static unroll over the batch tile
        x = x_ref[b]                     # (C_in, Np)   points on lanes
        z = jnp.dot(w, x, preferred_element_type=jnp.float32)   # one MXU matmul
        y = z + c                        # BN shift (scale already folded into W)
        act = jnp.where(y > 0, y, jnp.float32(0.2) * y)          # LeakyReLU(0.2)

        masked = act if col is None else jnp.where(col < n_valid, act, -jnp.inf)
        gmax = jnp.max(masked, axis=1, keepdims=True)            # (Cp, 1)

        if split:
            y_ref, g_ref = out_refs
            y_ref[b] = act.astype(y_ref.dtype)
            g_ref[b] = gmax.astype(g_ref.dtype)
        else:
            out_ref, = out_refs
            out_ref[b, :cp, :] = act.astype(out_ref.dtype)
            out_ref[b, cp:, :] = jnp.broadcast_to(gmax, act.shape).astype(
                out_ref.dtype)


def fel_forward(x, weight, bias, gamma, beta, *, eps=1e-5,
                materialize_global=True, matmul_dtype=jnp.float32):
    """x: (B, C_in, N); weight: (C_out, C_in); bias/gamma/beta: (C_out,).

    matmul_dtype=jnp.bfloat16 halves x-side HBM reads and feeds the MXU natively
    on v6e/v7x (accumulation + all elementwise math stay f32); keep f32 on v5e or
    when tight tolerances are required (the default).
    """
    del bias  # cancelled exactly by training-mode BN mean subtraction
    B, C_in, N = x.shape
    C_out = weight.shape[0]

    Np = _round_up(N, 128)    # lane-dense points axis
    Cp = _round_up(C_out, 8)  # sublane-aligned channel axis

    xf = x.astype(jnp.float32)
    wf = weight.astype(jnp.float32)

    # ---- BN batch statistics of z = W @ x via a Gram-matrix reduction (XLA) ----
    cnt = jnp.float32(B * N)
    x_sum = jnp.sum(xf, axis=(0, 2))                    # (C_in,)
    gram = jnp.einsum("bin,bjn->ij", xf, xf)            # (C_in, C_in)
    z_sum = wf @ x_sum                                  # (C_out,)
    z_sumsq = jnp.sum((wf @ gram) * wf, axis=1)         # (C_out,)
    mean = z_sum / cnt
    # TODO(synk): E[z^2]-E[z]^2 cancels badly if |mean| >> std; switch to a
    #             shifted/centered Gram if channel means can become large.
    var = jnp.maximum(z_sumsq / cnt - mean * mean, 0.0)  # biased variance
    a = gamma.astype(jnp.float32) * jax.lax.rsqrt(var + eps)
    shift = beta.astype(jnp.float32) - mean * a
    w_eff = a[:, None] * wf                              # fold BN scale into W

    # ---- pad to TPU-friendly shapes ----
    if Cp != C_out:
        w_eff = jnp.pad(w_eff, ((0, Cp - C_out), (0, 0)))
        shift = jnp.pad(shift, (0, Cp - C_out))
    shift = shift.reshape(Cp, 1)
    x_p = xf if Np == N else jnp.pad(xf, ((0, 0), (0, 0), (0, Np - N)))
    x_p = x_p.astype(matmul_dtype)
    w_eff = w_eff.astype(matmul_dtype)

    out_dtype = jnp.float32

    x_bytes = C_in * Np * x_p.dtype.itemsize
    out_bytes = (2 if materialize_global else 1) * Cp * Np * 4
    bt = _pick_batch_tile(B, x_bytes + out_bytes)
    grid = (B // bt,)

    in_specs = [
        pl.BlockSpec((bt, C_in, Np), lambda i: (i, 0, 0)),
        pl.BlockSpec((Cp, C_in), lambda i: (0, 0)),
        pl.BlockSpec((Cp, 1), lambda i: (0, 0)),
    ]
    if materialize_global:
        out_shape = jax.ShapeDtypeStruct((B, 2 * Cp, Np), out_dtype)
        out_specs = pl.BlockSpec((bt, 2 * Cp, Np), lambda i: (i, 0, 0))
    else:
        out_shape = (jax.ShapeDtypeStruct((B, Cp, Np), out_dtype),
                     jax.ShapeDtypeStruct((B, Cp, 1), out_dtype))
        out_specs = (pl.BlockSpec((bt, Cp, Np), lambda i: (i, 0, 0)),
                     pl.BlockSpec((bt, Cp, 1), lambda i: (i, 0, 0)))

    kernel = functools.partial(_fel_kernel, cp=Cp, n_valid=N, bt=bt,
                               split=not materialize_global)
    res = pl.pallas_call(
        kernel,
        out_shape=out_shape,
        grid=grid,
        in_specs=in_specs,
        out_specs=out_specs,
        compiler_params=pltpu.CompilerParams(
            dimension_semantics=("parallel",),
            vmem_limit_bytes=32 << 20),
    )(x_p, w_eff, shift)

    # ---- depad (fallback only; align N/C_out upstream to take the no-copy path) ----
    if materialize_global:
        out_p = res
        if Cp == C_out and Np == N:
            return out_p
        if Cp == C_out:
            return out_p[:, :, :N]
        return jnp.concatenate(
            [out_p[:, :C_out, :N], out_p[:, Cp:Cp + C_out, :N]], axis=1)
    y_p, g_p = res
    if Cp == C_out and Np == N:
        return y_p, g_p
    return y_p[:, :C_out, :N], g_p[:, :C_out, :]


def fel_reference(x, weight, bias, gamma, beta):
    """Pure-JAX reference of the PyTorch forward (training-mode BN)."""
    y = jnp.einsum("oi,bin->bon", weight, x) + bias[None, :, None]
    mean = jnp.mean(y, axis=(0, 2), keepdims=True)
    var = jnp.mean((y - mean) ** 2, axis=(0, 2), keepdims=True)
    y_hat = (y - mean) / jnp.sqrt(var + 1e-5)
    y_hat = y_hat * gamma[None, :, None] + beta[None, :, None]
    act = jnp.where(y_hat > 0, y_hat, 0.2 * y_hat)
    g = jnp.max(act, axis=2, keepdims=True)
    g = jnp.broadcast_to(g, act.shape)
    return jnp.concatenate([act, g], axis=1)


if __name__ == "__main__":
    key = jax.random.PRNGKey(0)
    ks = jax.random.split(key, 10)

    # Case 1: TPU-aligned shapes (N % 128 == 0, C_out % 8 == 0) -> lane-dense
    # unmasked stores, no wrapper depad, grid of 2 "parallel" steps.
    B, C_in, N, C_out = 2, 4, 128, 8
    x = jax.random.normal(ks[0], (B, C_in, N), dtype=jnp.float32)
    weight = jax.random.normal(ks[1], (C_out, C_in), dtype=jnp.float32) * 0.5
    bias = jax.random.normal(ks[2], (C_out,), dtype=jnp.float32) * 0.1
    gamma = 1.0 + 0.1 * jax.random.normal(ks[3], (C_out,), dtype=jnp.float32)
    beta = 0.05 * jax.random.normal(ks[4], (C_out,), dtype=jnp.float32)

    out = jax.block_until_ready(fel_forward(x, weight, bias, gamma, beta))
    ref = fel_reference(x, weight, bias, gamma, beta)
    assert out.shape == (B, 2 * C_out, N)
    assert jnp.allclose(out, ref, atol=1e-4, rtol=1e-4), float(
        jnp.max(jnp.abs(out - ref)))

    # Compact global-feature variant (for fused consumers): activation half plus
    # gmax (B, C_out, 1) -- roughly half the output HBM bytes.
    y_half, gmax = fel_forward(x, weight, bias, gamma, beta,
                               materialize_global=False)
    y_half, gmax = jax.block_until_ready((y_half, gmax))
    assert y_half.shape == (B, C_out, N) and gmax.shape == (B, C_out, 1)
    assert jnp.allclose(y_half, ref[:, :C_out, :], atol=1e-4, rtol=1e-4)
    assert jnp.allclose(gmax, ref[:, C_out:, :1], atol=1e-4, rtol=1e-4)

    # Case 2: unaligned shapes exercise the masked point max, padded channels and
    # the wrapper depad fallback.
    B2, C_in2, N2, C_out2 = 3, 3, 50, 6
    x2 = jax.random.normal(ks[5], (B2, C_in2, N2), dtype=jnp.float32)
    w2 = jax.random.normal(ks[6], (C_out2, C_in2), dtype=jnp.float32) * 0.5
    b2 = jax.random.normal(ks[7], (C_out2,), dtype=jnp.float32) * 0.1
    g2 = 1.0 + 0.1 * jax.random.normal(ks[8], (C_out2,), dtype=jnp.float32)
    be2 = 0.05 * jax.random.normal(ks[9], (C_out2,), dtype=jnp.float32)

    out2 = jax.block_until_ready(fel_forward(x2, w2, b2, g2, be2))
    ref2 = fel_reference(x2, w2, b2, g2, be2)
    assert out2.shape == (B2, 2 * C_out2, N2)
    assert jnp.allclose(out2, ref2, atol=1e-4, rtol=1e-4), float(
        jnp.max(jnp.abs(out2 - ref2)))

    print("KERNEL_OK")
</pallas_src>

<mosaic_0001>
module attributes {stable_mosaic.version = 11 : i64} {
  func.func @_fel_kernel(%arg0: i32, %arg1: memref<1x4x128xf32, #tpu.memory_space<vmem>>, %arg2: memref<8x4xf32, #tpu.memory_space<vmem>>, %arg3: memref<8x1xf32, #tpu.memory_space<vmem>>, %arg4: memref<1x16x128xf32, #tpu.memory_space<vmem>>) attributes {dimension_semantics = [#tpu.dimension_semantics<parallel>], iteration_bounds = array<i64: 2>, scalar_prefetch = 0 : i64, scratch_operands = 0 : i64, tpu.core_type = #tpu.core_type<tc>, window_params = [{transform_indices = @transform_0, window_bounds = array<i64: 1, 4, 128>}, {pipeline_mode = #tpu.pipeline_mode<synchronous>, transform_indices = @transform_1, window_bounds = array<i64: 8, 4>}, {pipeline_mode = #tpu.pipeline_mode<synchronous>, transform_indices = @transform_2, window_bounds = array<i64: 8, 1>}, {transform_indices = @transform_3, window_bounds = array<i64: 1, 16, 128>}]} {
    %c0 = arith.constant 0 : index
    %c0_0 = arith.constant 0 : index
    %0 = vector.load %arg2[%c0, %c0_0] : memref<8x4xf32, #tpu.memory_space<vmem>>, vector<8x4xf32>
    %c0_1 = arith.constant 0 : index
    %c0_2 = arith.constant 0 : index
    %1 = vector.load %arg3[%c0_1, %c0_2] : memref<8x1xf32, #tpu.memory_space<vmem>>, vector<8x1xf32>
    %c0_3 = arith.constant 0 : index
    %c0_4 = arith.constant 0 : index
    %c0_5 = arith.constant 0 : index
    %2 = vector.load %arg1[%c0_3, %c0_4, %c0_5] : memref<1x4x128xf32, #tpu.memory_space<vmem>>, vector<1x4x128xf32>
    %3 = vector.shape_cast %2 : vector<1x4x128xf32> to vector<4x128xf32>
    %cst = arith.constant dense<0.000000e+00> : vector<8x128xf32>
    %4 = tpu.matmul %0, %3, %cst {dimension_numbers = #tpu.dot_dimension_numbers<[1], [0], [0], [1], [0, 0, 1, 1], [], []>} : vector<8x4xf32>, vector<4x128xf32>, vector<8x128xf32> -> vector<8x128xf32>
    %5 = vector.broadcast %1 : vector<8x1xf32> to vector<8x128xf32>
    %6 = arith.addf %4, %5 : vector<8x128xf32>
    %cst_6 = arith.constant 0.000000e+00 : f32
    %7 = vector.broadcast %cst_6 : f32 to vector<8x128xf32>
    %8 = arith.cmpf ogt, %6, %7 : vector<8x128xf32>
    %cst_7 = arith.constant 2.000000e-01 : f32
    %9 = vector.broadcast %cst_7 : f32 to vector<8x128xf32>
    %10 = arith.mulf %9, %6 : vector<8x128xf32>
    %11 = arith.select %8, %6, %10 : vector<8x128xi1>, vector<8x128xf32>
    %cst_8 = arith.constant dense<0xFF800000> : vector<8xf32>
    %12 = vector.multi_reduction <maximumf>, %11, %cst_8 [1] : vector<8x128xf32> to vector<8xf32>
    %13 = vector.shape_cast %12 : vector<8xf32> to vector<8x1xf32>
    %c0_9 = arith.constant 0 : index
    %c0_10 = arith.constant 0 : index
    %c0_11 = arith.constant 0 : index
    %14 = vector.load %arg4[%c0_9, %c0_10, %c0_11] : memref<1x16x128xf32, #tpu.memory_space<vmem>>, vector<1x8x128xf32>
    %15 = vector.shape_cast %14 : vector<1x8x128xf32> to vector<8x128xf32>
    %16 = vector.shape_cast %11 : vector<8x128xf32> to vector<1x8x128xf32>
    tpu.vector_store %arg4[%c0_9, %c0_10, %c0_11], %16 {strides = array<i32>} : memref<1x16x128xf32, #tpu.memory_space<vmem>>, vector<1x8x128xf32>,
    %17 = vector.shape_cast %13 : vector<8x1xf32> to vector<8x1xf32>
    %18 = vector.broadcast %17 : vector<8x1xf32> to vector<8x128xf32>
    %c0_12 = arith.constant 0 : index
    %c8 = arith.constant 8 : index
    %c0_13 = arith.constant 0 : index
    %19 = vector.load %arg4[%c0_12, %c8, %c0_13] : memref<1x16x128xf32, #tpu.memory_space<vmem>>, vector<1x8x128xf32>
    %20 = vector.shape_cast %19 : vector<1x8x128xf32> to vector<8x128xf32>
    %21 = vector.shape_cast %18 : vector<8x128xf32> to vector<1x8x128xf32>
    tpu.vector_store %arg4[%c0_12, %c8, %c0_13], %21 {strides = array<i32>} : memref<1x16x128xf32, #tpu.memory_space<vmem>>, vector<1x8x128xf32>,
    return
  }
  func.func @transform_0(%arg0: i32) -> (i32, i32, i32) {
    %c0_i32 = arith.constant 0 : i32
    %c0_i32_0 = arith.constant 0 : i32
    %c0_i32_1 = arith.constant 0 : i32
    return %arg0, %c0_i32, %c0_i32_0 : i32, i32, i32
  }
  func.func @transform_1(%arg0: i32) -> (i32, i32) {
    %c0_i32 = arith.constant 0 : i32
    %c0_i32_0 = arith.constant 0 : i32
    %c0_i32_1 = arith.constant 0 : i32
    return %c0_i32, %c0_i32_0 : i32, i32
  }
  func.func @transform_2(%arg0: i32) -> (i32, i32) {
    %c0_i32 = arith.constant 0 : i32
    %c0_i32_0 = arith.constant 0 : i32
    %c0_i32_1 = arith.constant 0 : i32
    return %c0_i32, %c0_i32_0 : i32, i32
  }
  func.func @transform_3(%arg0: i32) -> (i32, i32, i32) {
    %c0_i32 = arith.constant 0 : i32
    %c0_i32_0 = arith.constant 0 : i32
    %c0_i32_1 = arith.constant 0 : i32
    return %arg0, %c0_i32, %c0_i32_0 : i32, i32, i32
  }
}

</mosaic_0001>

<bundles_post_ra>
// kernel: tpu_custom_call.1
= control target key start
LH: loop header
LB: loop body
LE: loop exit
PB: predicated region body
PF: predicated region fallthrough
CT: control target
= control target key end

     0   :  { %8 = vsyncpa [#allocation3], 0  ;;  %s600_s0 = inlined_call_operand.vmem [shape: f32[2,4,128], index: 0, kind: input, shape index: {}]   ;;  %s601_s1 = inlined_call_operand.vmem [shape: f32[8,4], index: 1, kind: input, shape index: {}]   ;;  %s602_s2 = inlined_call_operand.vmem [shape: f32[8,1], index: 2, kind: input, shape index: {}]   ;;  %s603_s3 = inlined_call_operand.hbm [shape: f32[2,16,128], index: 3, kind: output, shape index: {}]  }
   0x1   :  { %10 = vsyncpa [#allocation3 + $0x1], 0  ;;  %s491_s12 = smov 0   ;;  %s493_s13 = smov 0  }
   0x2   :  { %s495_s14 = smov 0   ;;  %s497_s15 = smov 0  }
   0x3 LB: > { %s512_s16 = sadd.s32 4294967295, %s463_s15   ;;  %s335_s17 = sadd.s32 4294967294, %s463_s15   ;;  %s463_s15 = sphi %s497_s15, %s609_s15   ;;  %s459_s14 = sphi %s495_s14, %s608_s14   ;;  %s455_s13 = sphi %s493_s13, %s607_s13   ;;  %s451_s12 = sphi %s491_s12, %s606_s12  }
   0x4   : > { %s516_s18 = sadd.s32 1, %s463_s15   ;;  %s91_s19 = sadd.s32 1, %s459_s14 }
   0x5   : > { %s88_s20 = ssub.s32 %s463_s15, %s516_s18  ;;  %p101_p0 = scmp.ne.s32.totalorder %s459_s14, %s455_s13 }
   0x6   : > { %p89_p1 = scmp.eq.s32.totalorder %s88_s20, 0  ;;  %p102_p2 = scmp.eq.s32.totalorder %s512_s16, 1 }
   0x7   : > { %p107_p3 = scmp.ne.s32.totalorder %s455_s13, %s451_s12  ;;  %p108_p4 = scmp.eq.s32.totalorder %s335_s17, 1 }
   0x8   : > { %s527_s21 = scalar_select %p89_p1, %s459_s14, %s91_s19  }
   0x9   : > { %p529_p5 = por %p102_p2, %p101_p0  ;;  %p533_p6 = por %p108_p4, %p107_p3 }
   0xa   : > { %p338_p7 = scmp.ge.s32.totalorder %s463_s15, 1  ;;  %p139_p8 = scmp.lt.s32.totalorder %s463_s15, 3 }
   0xc   : > { %p140_p9 = pnand %p338_p7, %p139_p8 }
   0xd   : > { %p162_p10 = scmp.lt.s32.totalorder (!%p140_p9), %s512_s16, 1  ;;  %v465_v0 = vmov (!%p140_p9), 0.0   ;;  %vm466_vm0 = vmmov (!%p140_p9), 0   ;;  %v167_v1 = vld [vmem:[%s602_s2] sm:$0xff] (!%p140_p9)  ;;  %v467_v2 = vmov (!%p140_p9), 0   ;;  %vm178_vm1 = vcmask (!%p140_p9), 1043456  }
   0xe   : > { %143 = sbr.rel (%p140_p9) target bundleno = 401 (0x191), region = 32  ;;  %351 = vmatprep.subr.mxu0 (!%p140_p9), %v465_v0  ;;  %353 = vmatprep.mubr.msk.f32.mxu0 (!%p140_p9), %vm466_vm0, %v465_v0  ;;  %v166_v3 = vld [vmem:[%s601_s1] sm:$0xff] (!%p140_p9)  ;;  %vm174_vm2 = vcmask (!%p140_p9), 31744   ;;  %s159_s6 = sand.u32 (!%p140_p9), 1, %s455_s13  }
   0xf   : > { %400 = vset.pattern.permute.xlu0 (!%p140_p9), %v467_v2  ;;  %s339_s7 = sshll.u32 (!%p140_p9), %s159_s6, 4  ;;  %s348_s10 = sshll.u32 (!%p140_p9), %s512_s16, 8 }
  0x10   : > { %171 = vperm.xlu0 (!%p140_p9), %400, %v167_v1   ;;  %s161_s8 = scalar_lea.vmem (!%p140_p9), [#allocation2], %s339_s7  ;;  %s557_s19 = scalar_lea.hbm (!%p140_p9), %s603_s3, %s348_s10 }
  0x11   : > { %s273_s9 = sshll.u32 (!%p140_p9), %s161_s8, 4  ;;  %s559_s20 = scalar_lea.sflag (!%p140_p9), [#allocation3], %s159_s6  ;;  %s552_s9 = int_to_ptr.vmem [resolvable:$true] %s273_s9 }
  0x12   : > { %s401_s24 = scalar_lea.vmem (!%p140_p9), %s552_s9, 256 }
  0x13   : > { %p402_p11 = scmp.ne.s32.totalorder (!%p140_p9), %s552_s9, %s401_s24 }
  0x15   : > { %s163_s26 = scalar_select %p162_p10, %s512_s16, 1 }
  0x16   : > { %p403_p12 = pnand %p402_p11, %p529_p5  ;;  %s468_s16 = smov [#allocation2]  }
  0x17   : > { %s340_s27 = sshll.u32 %s163_s26, 2  ;;  %s405_s25 = sshll.u32 %s468_s16, 4  ;;  %s406_s25 = int_to_ptr.vmem [resolvable:$false] %s405_s25 }
  0x18   : > { %s165_s30 = scalar_lea.vmem %s600_s0, %s340_s27  ;;  %p404_p13 = pneg %p403_p12 }
  0x19   : > { %v168_v4 = vld [vmem:[%s165_s30] sm:$0xf]  ;;  %s407_s26 = scalar_lea.vmem %s406_s25, 512  ;;  %p408_p0 = scmp.lt.s32.totalorder %s552_s9, %s406_s25 }
  0x1a   : > { %352 = vmatpush3.msk.msra.mxu0 %vm178_vm1, %v168_v4  ;;  %p409_p1 = scmp.lt.s32.totalorder %s407_s26, %s401_s24 }
  0x1b   : > { %354 = vmatmul.mubr.msk.f32.vlgmr.msra.gmra.mrb[0].mxu0 %vm174_vm2, %v166_v3 }
  0x1c   : > { %p410_p2 = por %p409_p1, %p408_p0 }
  0x1e   : > { %p411_p3 = pnand %p410_p2, %p404_p13 }
  0x8f   : > { %v172_v5 = vpop.permute.xlu0 %171 }
  0xee   : > { %v248_v6 = vpop.f32.mrb[0].mxu0 }
  0xef   : > { %v249_v7 = vadd.f32 %v248_v6, %v172_v5  ;;  %v355_v8 = vpop.f32.mrb[1].mxu0 }
  0xf1   : > { %vm252_vm3 = vcmp.gt.f32.partialorder %v249_v7, 0.0  ;;  %v253_v9 = vmul.f32 0.2, %v249_v7 }
  0xf3   : > { %v254_v10 = vsel %vm252_vm3, %v249_v7, %v253_v9 }
  0xf4   : > { %255 = vmax.xlane.f32.xlu0 %v254_v10  ;;  %257 = vst [vmem:[%s161_s8] sm:$0xff] %v254_v10 }
 0x181   : > { %v256_v11 = vpop.xlane.xlu0 %255 }
 0x182   : > { %258 = vst [vmem:[%s161_s8 + $0x8] sm:$0xff] %v256_v11 }
 0x183   : > { %414 = shalt.err (!%p411_p3)
}
 0x184   : > { %s415_s27 = scalar_lea.hbm %s557_s19, 256  ;;  %s419_s30 = scalar_lea.hbm %s603_s3, 512 }
 0x185   : > { %p416_p4 = scmp.ne.s32.totalorder %s557_s19, %s415_s27  ;;  %p420_p9 = scmp.lt.u32.totalorder %s557_s19, %s603_s3 }
 0x186   : > { %p421_p10 = scmp.lt.u32.totalorder %s419_s30, %s415_s27  ;;  %p423_p12 = scmp.lt.u32.totalorder %s415_s27, %s557_s19 }
 0x187   : > { %p417_p7 = pnand %p416_p4, %p529_p5 }
 0x188   : > { %p422_p11 = por %p421_p10, %p420_p9 }
 0x189   : > { %p418_p8 = pneg %p417_p7 }
 0x18a   : > { %p424_p13 = por %p423_p12, %p422_p11 }
 0x18c   : > { %p425_p0 = pnand %p424_p13, %p418_p8 }
 0x18e   : > { %428 = shalt.err (!%p425_p0)
}
 0x18f   : > { %s469_s6 = smov 128   ;;  %s470_s7 = smov 8  }
 0x190   : > { %356 = dma.vmem_to_hbm [thread:$0]  (%p529_p5), %s552_s9, 256, %s557_s19, %s559_s20, %s469_s6, %s469_s6, %s470_s7  }
 0x191 PF: > { %p362_p1 = scmp.ge.s32.totalorder %s463_s15, 2  ;;  %s288_s8 = sand.u32 1, %s451_s12  }
 0x192   : > { %s289_s10 = scalar_lea.sflag [#allocation3], %s288_s8 }
 0x193   : > { %p359_p2 = pnand %p362_p1, %p533_p6 }
 0x195   : > { %446 = dma.done.wait (!%p359_p2), %s289_s10, 256  }
 0x196   : > { %448 = vsyncadd (!%p359_p2), %s289_s10, 4294967040  ;;  %p13_p3 = scmp.ge.s32.totalorder %s516_s18, 4   ;;  %s606_s12 = smov %s455_s13 }
 0x197   : > { %s607_s13 = smov %s459_s14  ;;  %s608_s14 = smov %s527_s21 }
 0x198   : > { %s609_s15 = smov %s516_s18  ;;  %15 = sbr.rel (!%p13_p3) target bundleno = 3 (0x3), region = 67 }
 0x19f   :  { %294 = vsyncpa [#allocation3], 1 }
 0x1a0   :  { %296 = vsyncpa [#allocation3 + $0x1], 1 }

</bundles_post_ra>
